<compile_context>
chip_gen: v7x
topology: tpu7x:2x2x1
jax: 0.10.0
libtpu: 0.0.40
codegen_flags: <defaults>
</compile_context>

<pallas_src>
import math
from functools import partial

import jax
import jax.numpy as jnp
from jax.experimental import pallas as pl
from jax.experimental.pallas import tpu as pltpu


# ---------------------------------------------------------------------------
# Host-side im2col (layout only, no FLOPs).
# TODO(synk): the Conv2d window gather for overlapping patches has no clean
# Pallas equivalent, so it is done with host-side reshapes / strided slices;
# all multiply-accumulate work happens inside the Pallas kernel.
def _im2col(x, ps, stride, pad):
    """x: (B, C, H, W) -> (B*Ho*Wo, C*ps*ps) patches in (c, ky, kx) order."""
    B, C, H, W = x.shape
    if pad > 0:
        x = jnp.pad(x, ((0, 0), (0, 0), (pad, pad), (pad, pad)))
    Hp, Wp = H + 2 * pad, W + 2 * pad
    Ho = (Hp - ps) // stride + 1
    Wo = (Wp - ps) // stride + 1
    if ps == stride and pad == 0:
        # Non-overlapping windows: pure reshape/transpose.
        p = x.reshape(B, C, Ho, ps, Wo, ps)
        p = p.transpose(0, 2, 4, 1, 3, 5)              # (B, Ho, Wo, C, ps, ps)
        return p.reshape(B * Ho * Wo, C * ps * ps), Ho, Wo
    cols = []
    for ky in range(ps):
        for kx in range(ps):
            v = jax.lax.slice(
                x,
                (0, 0, ky, kx),
                (B, C, ky + stride * (Ho - 1) + 1, kx + stride * (Wo - 1) + 1),
                (1, 1, stride, stride))                # (B, C, Ho, Wo)
            cols.append(v)
    p = jnp.stack(cols, axis=2)                        # (B, C, ps*ps, Ho, Wo)
    p = p.transpose(0, 3, 4, 1, 2)                     # (B, Ho, Wo, C, ps*ps)
    return p.reshape(B * Ho * Wo, C * ps * ps), Ho, Wo


# ---------------------------------------------------------------------------
# Kernel: per row-tile, run every branch's matmul (f32 MXU accumulation),
# add biases, concatenate along the lane axis, single full-width store.
def _patch_embed_kernel(n_branches, *refs):
    p_refs = refs[:n_branches]
    w_refs = refs[n_branches:2 * n_branches]
    b_refs = refs[2 * n_branches:3 * n_branches]
    o_ref = refs[3 * n_branches]
    ys = []
    for p, w, b in zip(p_refs, w_refs, b_refs):
        y = jnp.dot(p[...], w[...], preferred_element_type=jnp.float32)
        ys.append(y + b[...])
    y = ys[0] if n_branches == 1 else jnp.concatenate(ys, axis=-1)
    o_ref[...] = y.astype(o_ref.dtype)


def _round_up(v, m):
    return ((v + m - 1) // m) * m


def _pick_tile_m(M, Ks, Ds, requested, in_bytes,
                 vmem_budget_bytes=24 * 1024 * 1024):
    """Largest row tile (multiple of 8) whose double-buffered VMEM footprint
    stays under a conservative budget (also fits v7x's 64 MiB VMEM)."""
    E = sum(Ds)
    weight_bytes = (sum(K * D for K, D in zip(Ks, Ds)) * in_bytes + E * 4)
    tile_m = max(8, min(_round_up(requested, 8), _round_up(M, 8)))
    while tile_m > 8:
        per_step = (tile_m * sum(Ks) * in_bytes      # input patch tiles
                    + tile_m * E * 4) * 2            # + output tile, x2 buffers
        if per_step + 2 * weight_bytes <= vmem_budget_bytes:
            break
        tile_m = max(8, _round_up(tile_m // 2, 8))
    return tile_m


# ---------------------------------------------------------------------------
def patch_embed_pallas(x, weights, biases, patch_sizes, *, stride=4,
                       tile_m=256, use_bf16=False):
    """CrossFormer PatchEmbed forward (norm_layer=None).

    x:       (B, C, H, W) float32 images.
    weights: list; weights[i] is the Conv2d weight of shape (dim_i, C, ps_i, ps_i).
    biases:  list; biases[i] has shape (dim_i,).
    Returns (tokens, H, W) with tokens of shape (B, (H//4)*(W//4), sum(dim_i)).
    """
    B, C, H, W = x.shape
    n = len(patch_sizes)
    assert len(weights) == n and len(biases) == n

    compute_dtype = jnp.bfloat16 if use_bf16 else x.dtype

    patch_mats, Ks, Ds = [], [], []
    Ho = Wo = None
    for wt, ps in zip(weights, patch_sizes):
        pad = (ps - stride) // 2
        p, Ho, Wo = _im2col(x, ps, stride, pad)
        patch_mats.append(p.astype(compute_dtype))
        Ks.append(p.shape[1])
        Ds.append(wt.shape[0])

    E = sum(Ds)
    M = B * Ho * Wo

    # (dim_i, C, ps, ps) -> (C*ps*ps, dim_i), matching the (c, ky, kx) patch order.
    w_mats = [wt.reshape(wt.shape[0], -1).T.astype(compute_dtype)
              for wt in weights]
    b_mats = [bs.reshape(1, -1).astype(jnp.float32) for bs in biases]

    in_bytes = jnp.dtype(compute_dtype).itemsize
    tile_m = _pick_tile_m(M, Ks, Ds, tile_m, in_bytes)

    n_tiles = pl.cdiv(M, tile_m)
    M_pad = n_tiles * tile_m
    if M_pad != M:
        patch_mats = [jnp.pad(p, ((0, M_pad - M), (0, 0))) for p in patch_mats]

    in_specs = (
        [pl.BlockSpec((tile_m, K), lambda i: (i, 0)) for K in Ks]
        + [pl.BlockSpec((K, D), lambda i: (0, 0)) for K, D in zip(Ks, Ds)]
        + [pl.BlockSpec((1, D), lambda i: (0, 0)) for D in Ds]
    )
    out_spec = pl.BlockSpec((tile_m, E), lambda i: (i, 0))

    mac_elems = sum(K * D for K, D in zip(Ks, Ds))
    cost = pl.CostEstimate(
        flops=int(2 * M_pad * mac_elems),
        transcendentals=0,
        bytes_accessed=int(M_pad * sum(Ks) * in_bytes
                           + mac_elems * in_bytes
                           + E * 4
                           + M_pad * E * jnp.dtype(x.dtype).itemsize))

    out = pl.pallas_call(
        partial(_patch_embed_kernel, n),
        out_shape=jax.ShapeDtypeStruct((M_pad, E), x.dtype),
        grid_spec=pltpu.PrefetchScalarGridSpec(
            num_scalar_prefetch=0,
            grid=(n_tiles,),
            in_specs=in_specs,
            out_specs=out_spec,
        ),
        compiler_params=pltpu.CompilerParams(
            dimension_semantics=("parallel",),
            vmem_limit_bytes=32 * 1024 * 1024,
        ),
        cost_estimate=cost,
    )(*patch_mats, *w_mats, *b_mats)

    tokens = out[:M].reshape(B, Ho * Wo, E)
    return tokens, H, W


# ---------------------------------------------------------------------------
# References (pure JAX) for validation.
def patch_embed_reference_conv(x, weights, biases, patch_sizes, stride=4):
    outs = []
    for wt, bs, ps in zip(weights, biases, patch_sizes):
        pad = (ps - stride) // 2
        y = jax.lax.conv_general_dilated(
            x, wt, window_strides=(stride, stride),
            padding=((pad, pad), (pad, pad)),
            dimension_numbers=("NCHW", "OIHW", "NCHW"))
        y = y + bs[None, :, None, None]
        Bc, D, Ho, Wo = y.shape
        outs.append(y.reshape(Bc, D, Ho * Wo).transpose(0, 2, 1))
    return jnp.concatenate(outs, axis=2)


def patch_embed_reference_matmul(x, weights, biases, patch_sizes, stride=4):
    B = x.shape[0]
    outs = []
    for wt, bs, ps in zip(weights, biases, patch_sizes):
        pad = (ps - stride) // 2
        p, Ho, Wo = _im2col(x, ps, stride, pad)
        y = jnp.dot(p, wt.reshape(wt.shape[0], -1).T) + bs
        outs.append(y.reshape(B, Ho * Wo, -1))
    return jnp.concatenate(outs, axis=2)


# ---------------------------------------------------------------------------
if __name__ == "__main__":
    # Multi-scale patch embedding at small, test-friendly sizes.
    B, in_chans, H, W = 2, 4, 64, 64
    patch_sizes = [4, 8]
    embed_dim = 128          # lane-dense output (multiple of 128)

    # Branch output dims exactly as in PatchEmbed.__init__.
    dims = []
    for i, ps in enumerate(patch_sizes):
        if i == len(patch_sizes) - 1:
            dims.append(embed_dim // 2 ** i)
        else:
            dims.append(embed_dim // 2 ** (i + 1))
    assert sum(dims) == embed_dim

    key = jax.random.PRNGKey(0)
    kx, *wkeys = jax.random.split(key, 1 + 2 * len(patch_sizes))

    x = jax.random.normal(kx, (B, in_chans, H, W), dtype=jnp.float32)

    # Deterministic init mimicking nn.Conv2d defaults (uniform +/- 1/sqrt(fan_in)).
    weights, biases = [], []
    for i, (ps, d) in enumerate(zip(patch_sizes, dims)):
        fan_in = in_chans * ps * ps
        lim = 1.0 / math.sqrt(fan_in)
        weights.append(jax.random.uniform(
            wkeys[2 * i], (d, in_chans, ps, ps),
            minval=-lim, maxval=lim, dtype=jnp.float32))
        biases.append(jax.random.uniform(
            wkeys[2 * i + 1], (d,),
            minval=-lim, maxval=lim, dtype=jnp.float32))

    tokens, ret_H, ret_W = patch_embed_pallas(x, weights, biases, patch_sizes)
    tokens = jax.block_until_ready(tokens)

    assert tokens.shape == (B, (H // 4) * (W // 4), embed_dim)
    assert ret_H == H and ret_W == W

    ref_mm = patch_embed_reference_matmul(x, weights, biases, patch_sizes)
    ref_cv = patch_embed_reference_conv(x, weights, biases, patch_sizes)
    # Tight check against the same-precision matmul reference.
    assert jnp.allclose(tokens, ref_mm, atol=1e-4, rtol=1e-4), "mismatch vs matmul ref"
    # Looser check against true Conv2d semantics (absorbs XLA conv precision).
    assert jnp.allclose(tokens, ref_cv, atol=2e-2, rtol=2e-2), "mismatch vs conv ref"

    # bf16 MXU inputs (f32 accumulation) — the v6e/v7x fast path.
    tokens_bf16, _, _ = patch_embed_pallas(x, weights, biases, patch_sizes,
                                           use_bf16=True)
    tokens_bf16 = jax.block_until_ready(tokens_bf16)
    assert jnp.allclose(tokens_bf16, ref_mm, atol=5e-2, rtol=5e-2), "mismatch (bf16)"

    print("KERNEL_OK")
</pallas_src>

<mosaic_0001>
module attributes {stable_mosaic.version = 11 : i64} {
  func.func @_patch_embed_kernel(%arg0: i32, %arg1: memref<256x64xf32, #tpu.memory_space<vmem>>, %arg2: memref<256x256xf32, #tpu.memory_space<vmem>>, %arg3: memref<64x64xf32, #tpu.memory_space<vmem>>, %arg4: memref<256x64xf32, #tpu.memory_space<vmem>>, %arg5: memref<1x64xf32, #tpu.memory_space<vmem>>, %arg6: memref<1x64xf32, #tpu.memory_space<vmem>>, %arg7: memref<256x128xf32, #tpu.memory_space<vmem>>) attributes {dimension_semantics = [#tpu.dimension_semantics<parallel>], iteration_bounds = array<i64: 2>, scalar_prefetch = 0 : i64, scratch_operands = 0 : i64, tpu.core_type = #tpu.core_type<tc>, window_params = [{transform_indices = @transform_0, window_bounds = array<i64: 256, 64>}, {transform_indices = @transform_1, window_bounds = array<i64: 256, 256>}, {pipeline_mode = #tpu.pipeline_mode<synchronous>, transform_indices = @transform_2, window_bounds = array<i64: 64, 64>}, {pipeline_mode = #tpu.pipeline_mode<synchronous>, transform_indices = @transform_3, window_bounds = array<i64: 256, 64>}, {pipeline_mode = #tpu.pipeline_mode<synchronous>, transform_indices = @transform_4, window_bounds = array<i64: 1, 64>}, {pipeline_mode = #tpu.pipeline_mode<synchronous>, transform_indices = @transform_5, window_bounds = array<i64: 1, 64>}, {transform_indices = @transform_6, window_bounds = array<i64: 256, 128>}]} {
    %c0 = arith.constant 0 : index
    %c0_0 = arith.constant 0 : index
    %0 = vector.load %arg1[%c0, %c0_0] : memref<256x64xf32, #tpu.memory_space<vmem>>, vector<256x64xf32>
    %c0_1 = arith.constant 0 : index
    %c0_2 = arith.constant 0 : index
    %1 = vector.load %arg3[%c0_1, %c0_2] : memref<64x64xf32, #tpu.memory_space<vmem>>, vector<64x64xf32>
    %cst = arith.constant dense<0.000000e+00> : vector<256x64xf32>
    %2 = tpu.matmul %0, %1, %cst {dimension_numbers = #tpu.dot_dimension_numbers<[1], [0], [0], [1], [0, 0, 1, 1], [], []>} : vector<256x64xf32>, vector<64x64xf32>, vector<256x64xf32> -> vector<256x64xf32>
    %c0_3 = arith.constant 0 : index
    %c0_4 = arith.constant 0 : index
    %3 = vector.load %arg5[%c0_3, %c0_4] : memref<1x64xf32, #tpu.memory_space<vmem>>, vector<1x64xf32>
    %4 = vector.broadcast %3 : vector<1x64xf32> to vector<256x64xf32>
    %5 = arith.addf %2, %4 : vector<256x64xf32>
    %c0_5 = arith.constant 0 : index
    %c0_6 = arith.constant 0 : index
    %6 = vector.load %arg2[%c0_5, %c0_6] : memref<256x256xf32, #tpu.memory_space<vmem>>, vector<256x256xf32>
    %c0_7 = arith.constant 0 : index
    %c0_8 = arith.constant 0 : index
    %7 = vector.load %arg4[%c0_7, %c0_8] : memref<256x64xf32, #tpu.memory_space<vmem>>, vector<256x64xf32>
    %cst_9 = arith.constant dense<0.000000e+00> : vector<256x64xf32>
    %8 = tpu.matmul %6, %7, %cst_9 {dimension_numbers = #tpu.dot_dimension_numbers<[1], [0], [0], [1], [0, 0, 1, 1], [], []>} : vector<256x256xf32>, vector<256x64xf32>, vector<256x64xf32> -> vector<256x64xf32>
    %c0_10 = arith.constant 0 : index
    %c0_11 = arith.constant 0 : index
    %9 = vector.load %arg6[%c0_10, %c0_11] : memref<1x64xf32, #tpu.memory_space<vmem>>, vector<1x64xf32>
    %10 = vector.broadcast %9 : vector<1x64xf32> to vector<256x64xf32>
    %11 = arith.addf %8, %10 : vector<256x64xf32>
    %12 = tpu.concatenate %5, %11 in 1 : vector<256x64xf32>, vector<256x64xf32> -> vector<256x128xf32>
    %c0_12 = arith.constant 0 : index
    %c0_13 = arith.constant 0 : index
    %13 = vector.load %arg7[%c0_12, %c0_13] : memref<256x128xf32, #tpu.memory_space<vmem>>, vector<256x128xf32>
    tpu.vector_store %arg7[%c0_12, %c0_13], %12 {strides = array<i32>} : memref<256x128xf32, #tpu.memory_space<vmem>>, vector<256x128xf32>,
    return
  }
  func.func @transform_0(%arg0: i32) -> (i32, i32) {
    %c0_i32 = arith.constant 0 : i32
    %c0_i32_0 = arith.constant 0 : i32
    return %arg0, %c0_i32 : i32, i32
  }
  func.func @transform_1(%arg0: i32) -> (i32, i32) {
    %c0_i32 = arith.constant 0 : i32
    %c0_i32_0 = arith.constant 0 : i32
    return %arg0, %c0_i32 : i32, i32
  }
  func.func @transform_2(%arg0: i32) -> (i32, i32) {
    %c0_i32 = arith.constant 0 : i32
    %c0_i32_0 = arith.constant 0 : i32
    %c0_i32_1 = arith.constant 0 : i32
    return %c0_i32, %c0_i32_0 : i32, i32
  }
  func.func @transform_3(%arg0: i32) -> (i32, i32) {
    %c0_i32 = arith.constant 0 : i32
    %c0_i32_0 = arith.constant 0 : i32
    %c0_i32_1 = arith.constant 0 : i32
    return %c0_i32, %c0_i32_0 : i32, i32
  }
  func.func @transform_4(%arg0: i32) -> (i32, i32) {
    %c0_i32 = arith.constant 0 : i32
    %c0_i32_0 = arith.constant 0 : i32
    %c0_i32_1 = arith.constant 0 : i32
    return %c0_i32, %c0_i32_0 : i32, i32
  }
  func.func @transform_5(%arg0: i32) -> (i32, i32) {
    %c0_i32 = arith.constant 0 : i32
    %c0_i32_0 = arith.constant 0 : i32
    %c0_i32_1 = arith.constant 0 : i32
    return %c0_i32, %c0_i32_0 : i32, i32
  }
  func.func @transform_6(%arg0: i32) -> (i32, i32) {
    %c0_i32 = arith.constant 0 : i32
    %c0_i32_0 = arith.constant 0 : i32
    return %arg0, %c0_i32 : i32, i32
  }
}

</mosaic_0001>

<bundles_post_ra>
// kernel: tpu_custom_call.1
= control target key start
LH: loop header
LB: loop body
LE: loop exit
PB: predicated region body
PF: predicated region fallthrough
CT: control target
= control target key end

     0   :  { %11 = vsyncpa [#allocation3], 0  ;;  %s2319_s0 = inlined_call_operand.vmem [shape: f32[512,64], index: 0, kind: input, shape index: {}]   ;;  %s2320_s1 = inlined_call_operand.vmem [shape: f32[512,256], index: 1, kind: input, shape index: {}]   ;;  %s2321_s2 = inlined_call_operand.vmem [shape: f32[64,64], index: 2, kind: input, shape index: {}]   ;;  %s2322_s3 = inlined_call_operand.vmem [shape: f32[256,64], index: 3, kind: input, shape index: {}]   ;;  %s2323_s4 = inlined_call_operand.vmem [shape: f32[1,64], index: 4, kind: input, shape index: {}]   ;;  %s2324_s5 = inlined_call_operand.vmem [shape: f32[1,64], index: 5, kind: input, shape index: {}]   ;;  %s2325_s6 = inlined_call_operand.hbm [shape: f32[512,128], index: 6, kind: output, shape index: {}]  }
   0x1   :  { %13 = vsyncpa [#allocation3 + $0x1], 0  ;;  %s1653_s21 = smov 0   ;;  %s1655_s22 = smov 0  }
   0x2   :  { %s1657_s23 = smov 0   ;;  %s1659_s24 = smov 0  }
   0x3 LB: > { %s1674_s25 = sadd.s32 4294967295, %s1611_s24   ;;  %s1255_s26 = sadd.s32 4294967294, %s1611_s24   ;;  %s1611_s24 = sphi %s1659_s24, %s2331_s24   ;;  %s1607_s23 = sphi %s1657_s23, %s2330_s23   ;;  %s1603_s22 = sphi %s1655_s22, %s2329_s22   ;;  %s1599_s21 = sphi %s1653_s21, %s2328_s21  }
   0x4   : > { %s1678_s27 = sadd.s32 1, %s1611_s24   ;;  %s162_s28 = sadd.s32 1, %s1607_s23 }
   0x5   : > { %s159_s29 = ssub.s32 %s1611_s24, %s1678_s27  ;;  %p172_p0 = scmp.ne.s32.totalorder %s1607_s23, %s1603_s22 }
   0x6   : > { %p160_p1 = scmp.eq.s32.totalorder %s159_s29, 0  ;;  %p173_p2 = scmp.eq.s32.totalorder %s1674_s25, 1 }
   0x7   : > { %p178_p3 = scmp.ne.s32.totalorder %s1603_s22, %s1599_s21  ;;  %p179_p4 = scmp.eq.s32.totalorder %s1255_s26, 1 }
   0x8   : > { %s1689_s30 = scalar_select %p160_p1, %s1607_s23, %s162_s28  }
   0x9   : > { %p1691_p5 = por %p173_p2, %p172_p0  ;;  %p1695_p6 = por %p179_p4, %p178_p3 }
   0xa   : > { %p1258_p7 = scmp.ge.s32.totalorder %s1611_s24, 1  ;;  %p228_p8 = scmp.lt.s32.totalorder %s1611_s24, 3 }
   0xc   : > { %p229_p9 = pnand %p1258_p7, %p228_p8 }
   0xd   : > { %v310_v0 = vld [vmem:[%s2321_s2] sm:$0xff] (!%p229_p9)  ;;  %v311_v1 = vld [vmem:[%s2321_s2 + $0x8] sm:$0xff] (!%p229_p9)  ;;  %s1260_s15 = sshll.u32 (!%p229_p9), %s1674_s25, 5  ;;  %v1613_v3 = vmov (!%p229_p9), 0.0|0.0   ;;  %v312_v6 = vld [vmem:[%s2321_s2 + $0x10] sm:$0xff] (!%p229_p9)  ;;  %vm325_vm0 = vcmask (!%p229_p9), 523264  }
   0xe   : > { %232 = sbr.rel (%p229_p9) target bundleno = 498 (0x1f2), region = 44  ;;  %v711_v2 = vld [vmem:[%s2322_s3] sm:$0xff] (!%p229_p9)  ;;  %1474 = vmatprep.subr.bf16.mxu1 (!%p229_p9), %v1613_v3  ;;  %v1410_v4 = vpack.c.bf16 (!%p229_p9), %v311_v1, %v310_v0  ;;  %v712_v5 = vld [vmem:[%s2322_s3 + $0x8] sm:$0xff] (!%p229_p9)  ;;  %v313_v7 = vld [vmem:[%s2321_s2 + $0x18] sm:$0xff] (!%p229_p9)  ;;  %p265_p10 = scmp.lt.s32.totalorder (!%p229_p9), %s1260_s15, 63 }
   0xf   : > { %v1427_v8 = vpack.c.bf16 (!%p229_p9), %v712_v5, %v711_v2  ;;  %v1414_v9 = vpack.c.bf16 (!%p229_p9), %v313_v7, %v312_v6  ;;  %v713_v10 = vld [vmem:[%s2322_s3 + $0x10] sm:$0xff] (!%p229_p9)  ;;  %v714_v11 = vld [vmem:[%s2322_s3 + $0x18] sm:$0xff] (!%p229_p9)  ;;  %v314_v12 = vld [vmem:[%s2321_s2 + $0x20] sm:$0xff] (!%p229_p9)  ;;  %s1614_s19 = smov (!%p229_p9), 64   ;;  %s1305_s29 = sshll.u32 (!%p229_p9), %s1674_s25, 12 }
  0x10   : > { %1411 = vmatprep.subr.bf16.mxu0 (!%p229_p9), %v1410_v4  ;;  %v315_v13 = vld [vmem:[%s2321_s2 + $0x28] sm:$0xff] (!%p229_p9)  ;;  %v1430_v14 = vpack.c.bf16 (!%p229_p9), %v714_v11, %v713_v10  ;;  %v715_v16 = vld [vmem:[%s2322_s3 + $0x20] sm:$0xff] (!%p229_p9)  ;;  %v316_v18 = vld [vmem:[%s2321_s2 + $0x30] sm:$0xff] (!%p229_p9)  ;;  %s2269_s13 = scalar_lea.hbm (!%p229_p9), %s2325_s6, %s1305_s29  ;;  %s1615_s16 = smov (!%p229_p9), [#allocation2]  }
  0x11   : > { %1490 = vmatpush1.bf16.msra.mxu1 (!%p229_p9), %v1427_v8  ;;  %1413 = vmatpush3.bf16.msra.mxu0 (!%p229_p9), %v1410_v4  ;;  %v1418_v15 = vpack.c.bf16 (!%p229_p9), %v315_v13, %v314_v12  ;;  %v716_v17 = vld [vmem:[%s2322_s3 + $0x28] sm:$0xff] (!%p229_p9)  ;;  %v317_v19 = vld [vmem:[%s2321_s2 + $0x38] sm:$0xff] (!%p229_p9)  ;;  %v717_v23 = vld [vmem:[%s2322_s3 + $0x30] sm:$0xff] (!%p229_p9) }
  0x12   : > { %1475 = vmatprep.subr.bf16.mxu1 (!%p229_p9), %v1613_v3  ;;  %1415 = vmatprep.subr.bf16.mxu0 (!%p229_p9), %v1414_v9  ;;  %v1433_v21 = vpack.c.bf16 (!%p229_p9), %v716_v17, %v715_v16  ;;  %v1422_v22 = vpack.c.bf16 (!%p229_p9), %v317_v19, %v316_v18  ;;  %v718_v24 = vld [vmem:[%s2322_s3 + $0x38] sm:$0xff] (!%p229_p9)  ;;  %v719_v26 = vld [vmem:[%s2322_s3 + $0x40] sm:$0xff] (!%p229_p9)  ;;  %v720_v27 = vld [vmem:[%s2322_s3 + $0x48] sm:$0xff] (!%p229_p9) }
  0x13   : > { %v1436_v25 = vpack.c.bf16 (!%p229_p9), %v718_v24, %v717_v23  ;;  %v1439_v29 = vpack.c.bf16 (!%p229_p9), %v720_v27, %v719_v26  ;;  %v721_v30 = vld [vmem:[%s2322_s3 + $0x50] sm:$0xff] (!%p229_p9)  ;;  %v722_v31 = vld [vmem:[%s2322_s3 + $0x58] sm:$0xff] (!%p229_p9)  ;;  %v723_v35 = vld [vmem:[%s2322_s3 + $0x60] sm:$0xff] (!%p229_p9) }
  0x14   : > { %v1442_v34 = vpack.c.bf16 (!%p229_p9), %v722_v31, %v721_v30  ;;  %v724_v36 = vld [vmem:[%s2322_s3 + $0x68] sm:$0xff] (!%p229_p9)  ;;  %v725_v41 = vld [vmem:[%s2322_s3 + $0x70] sm:$0xff] (!%p229_p9)  ;;  %v726_v42 = vld [vmem:[%s2322_s3 + $0x78] sm:$0xff] (!%p229_p9) }
  0x15   : > { %s2333_s15 = smov (!%p265_p10, %s1260_s15), 63  ;;  %1491 = vmatpush1.bf16.msra.mxu1 %v1430_v14  ;;  %1417 = vmatpush3.bf16.msra.mxu0 %v1414_v9  ;;  %v1445_v40 = vpack.c.bf16 %v724_v36, %v723_v35  ;;  %v1448_v45 = vpack.c.bf16 %v726_v42, %v725_v41  ;;  %v727_v46 = vld [vmem:[%s2322_s3 + $0x80] sm:$0xff]  ;;  %v728_v47 = vld [vmem:[%s2322_s3 + $0x88] sm:$0xff]  ;;  %v729_v51 = vld [vmem:[%s2322_s3 + $0x90] sm:$0xff] }
  0x16   : > { %s1261_s20 = sshll.u32 %s2333_s15, 3  ;;  %1476 = vmatprep.subr.bf16.mxu1 %v1613_v3  ;;  %1419 = vmatprep.subr.bf16.mxu0 %v1418_v15  ;;  %s1304_s28 = sshll.u32 %s2333_s15, 4  ;;  %v1451_v50 = vpack.c.bf16 %v728_v47, %v727_v46  ;;  %v730_v52 = vld [vmem:[%s2322_s3 + $0x98] sm:$0xff]  ;;  %v731_v56 = vld [vmem:[%s2322_s3 + $0xa0] sm:$0xff]  ;;  %v732_v57 = vld [vmem:[%s2322_s3 + $0xa8] sm:$0xff] }
  0x17   : > { %s1752_s12 = scalar_lea.vmem %s2319_s0, %s1261_s20  ;;  %s1783_s15 = scalar_lea.vmem %s2320_s1, %s1304_s28  ;;  %v1454_v55 = vpack.c.bf16 %v730_v52, %v729_v51  ;;  %v1457_v60 = vpack.c.bf16 %v732_v57, %v731_v56  ;;  %v733_v61 = vld [vmem:[%s2322_s3 + $0xb0] sm:$0xff]  ;;  %v734_v62 = vld [vmem:[%s2322_s3 + $0xb8] sm:$0xff]  ;;  %v735_v2 = vld [vmem:[%s2322_s3 + $0xc0] sm:$0xff] }
  0x18   : > { %v278_v20 = vld [vmem:[%s1752_s12] sm:$0xff]  ;;  %v279_v28 = vld [vmem:[%s1752_s12 + $0x8] sm:$0xff]  ;;  %v280_v32 = vld [vmem:[%s1752_s12 + $0x10] sm:$0xff]  ;;  %v1460_v1 = vpack.c.bf16 %v734_v62, %v733_v61  ;;  %s261_s20 = sand.u32 1, %s1603_s22  }
  0x19   : > { %1362 = vmatprep.mubr.msk.f32.mxu0 %vm325_vm0, %v278_v20  ;;  %1492 = vmatpush1.bf16.msra.mxu1 %v1433_v21  ;;  %v281_v33 = vld [vmem:[%s1752_s12 + $0x18] sm:$0xff]  ;;  %v676_v37 = vld [vmem:[%s1783_s15 + $0xe8] sm:$0xff]  ;;  %v282_v38 = vld [vmem:[%s1752_s12 + $0x20] sm:$0xff]  ;;  %s1259_s26 = sshll.u32 %s261_s20, 8  ;;  %s2278_s25 = scalar_lea.sflag [#allocation3], %s261_s20 }
  0x1a   : > { %1421 = vmatpush3.bf16.msra.mxu0 %v1418_v15  ;;  %1477 = vmatprep.subr.bf16.mxu1 %v1613_v3  ;;  %v283_v39 = vld [vmem:[%s1752_s12 + $0x28] sm:$0xff]  ;;  %v284_v43 = vld [vmem:[%s1752_s12 + $0x30] sm:$0xff]  ;;  %v285_v44 = vld [vmem:[%s1752_s12 + $0x38] sm:$0xff]  ;;  %s2145_s28 = scalar_lea.vmem [#allocation2], %s1259_s26 }
  0x1b   : > { %1423 = vmatprep.subr.bf16.mxu0 %v1422_v22  ;;  %884 = vmatprep.mubr.f32.mxu1 %v676_v37  ;;  %v286_v48 = vld [vmem:[%s1752_s12 + $0x40] sm:$0xff]  ;;  %v287_v49 = vld [vmem:[%s1752_s12 + $0x48] sm:$0xff]  ;;  %v288_v53 = vld [vmem:[%s1752_s12 + $0x50] sm:$0xff]  ;;  %s1181_s9 = sshll.u32 %s2145_s28, 4  ;;  %s2271_s9 = int_to_ptr.vmem [resolvable:$true] %s1181_s9 }
  0x1c   : > { %v289_v54 = vld [vmem:[%s1752_s12 + $0x58] sm:$0xff]  ;;  %v290_v58 = vld [vmem:[%s1752_s12 + $0x60] sm:$0xff]  ;;  %v291_v59 = vld [vmem:[%s1752_s12 + $0x68] sm:$0xff]  ;;  %s1549_s14 = scalar_lea.vmem %s2271_s9, 4096 }
  0x1d   : > { %1493 = vmatpush1.bf16.msra.mxu1 %v1436_v25  ;;  %v292_v63 = vld [vmem:[%s1752_s12 + $0x70] sm:$0xff]  ;;  %v293_v0 = vld [vmem:[%s1752_s12 + $0x78] sm:$0xff]  ;;  %v736_v4 = vld [vmem:[%s2322_s3 + $0xc8] sm:$0xff]  ;;  %p1550_p11 = scmp.ne.s32.totalorder %s2271_s9, %s1549_s14 }
  0x1e   : > { %1425 = vmatpush3.bf16.msra.mxu0 %v1422_v22  ;;  %1478 = vmatprep.subr.bf16.mxu1 %v1613_v3  ;;  %v294_v5 = vld [vmem:[%s1752_s12 + $0x80] sm:$0xff]  ;;  %v295_v6 = vld [vmem:[%s1752_s12 + $0x88] sm:$0xff]  ;;  %v1463_v7 = vpack.c.bf16 %v736_v4, %v735_v2  ;;  %v738_v9 = vld [vmem:[%s2322_s3 + $0xd8] sm:$0xff] }
  0x1f   : > { %1426 = vmatprep.subr.bf16.mxu0 %v1613_v3  ;;  %v296_v10 = vld [vmem:[%s1752_s12 + $0x90] sm:$0xff]  ;;  %v297_v11 = vld [vmem:[%s1752_s12 + $0x98] sm:$0xff]  ;;  %v739_v13 = vld [vmem:[%s2322_s3 + $0xe0] sm:$0xff]  ;;  %p1551_p12 = pnand %p1550_p11, %p1691_p5 }
  0x20   : > { %v298_v15 = vld [vmem:[%s1752_s12 + $0xa0] sm:$0xff]  ;;  %v299_v16 = vld [vmem:[%s1752_s12 + $0xa8] sm:$0xff]  ;;  %v741_v18 = vld [vmem:[%s2322_s3 + $0xf0] sm:$0xff] }
  0x21   : > { %1363 = vmatmul.mubr.msk.f32.vlgmr.msra.gmra.mrb[0].mxu0 %vm325_vm0, %v279_v28  ;;  %1494 = vmatpush1.bf16.msra.mxu1 %v1439_v29  ;;  %v742_v19 = vld [vmem:[%s2322_s3 + $0xf8] sm:$0xff]  ;;  %v300_v20 = vld [vmem:[%s1752_s12 + $0xb0] sm:$0xff]  ;;  %v302_v23 = vld [vmem:[%s1752_s12 + $0xc0] sm:$0xff]  ;;  %p1552_p13 = pneg %p1551_p12 }
  0x22   : > { %1428 = vmatpush1.bf16.msra.mxu0 %v1427_v8  ;;  %1365 = vmatprep.mubr.msk.f32.mxu0 %vm325_vm0, %v280_v32  ;;  %v737_v8 = vld [vmem:[%s2322_s3 + $0xd0] sm:$0xff]  ;;  %v1472_v22 = vpack.c.bf16 %v742_v19, %v741_v18  ;;  %v675_v24 = vld [vmem:[%s1783_s15 + $0xe0] sm:$0xff]  ;;  %v678_v26 = vld [vmem:[%s1783_s15 + $0xf8] sm:$0xff] }
  0x23   : > { %1479 = vmatprep.subr.bf16.mxu1 %v1613_v3  ;;  %1429 = vmatprep.subr.bf16.mxu0 %v1613_v3  ;;  %v1466_v12 = vpack.c.bf16 %v738_v9, %v737_v8  ;;  %v304_v27 = vld [vmem:[%s1752_s12 + $0xd0] sm:$0xff]  ;;  %v680_v30 = vld [vmem:[%s1783_s15 + $0x108] sm:$0xff]  ;;  %v306_v31 = vld [vmem:[%s1752_s12 + $0xe0] sm:$0xff] }
  0x24   : > { %v677_v28 = vld [vmem:[%s1783_s15 + $0xf0] sm:$0xff]  ;;  %v679_v32 = vld [vmem:[%s1783_s15 + $0x100] sm:$0xff]  ;;  %v309_v37 = vld [vmem:[%s1752_s12 + $0xf8] sm:$0xff] }
  0x25   : > { %1366 = vmatmul.mubr.msk.f32.gmra.mrb[2].mxu0 %vm325_vm0, %v281_v33  ;;  %1495 = vmatpush1.bf16.msra.mxu1 %v1442_v34  ;;  %v307_v33 = vld [vmem:[%s1752_s12 + $0xe8] sm:$0xff]  ;;  %v308_v35 = vld [vmem:[%s1752_s12 + $0xf0] sm:$0xff]  ;;  %v647_v41 = vld [vmem:[%s1783_s15] sm:$0xff] }
  0x26   : > { %1431 = vmatpush1.bf16.msra.mxu0 %v1430_v14  ;;  %1368 = vmatprep.mubr.msk.f32.mxu0 %vm325_vm0, %v282_v38  ;;  %v740_v14 = vld [vmem:[%s2322_s3 + $0xe8] sm:$0xff]  ;;  %v681_v36 = vld [vmem:[%s1783_s15 + $0x110] sm:$0xff]  ;;  %v686_v42 = vld [vmem:[%s1783_s15 + $0x138] sm:$0xff] }
  0x27   : > { %1480 = vmatprep.subr.bf16.mxu1 %v1613_v3  ;;  %1432 = vmatprep.subr.bf16.mxu0 %v1613_v3  ;;  %v1469_v17 = vpack.c.bf16 %v740_v14, %v739_v13  ;;  %v684_v38 = vld [vmem:[%s1783_s15 + $0x128] sm:$0xff]  ;;  %v687_v47 = vld [vmem:[%s1783_s15 + $0x140] sm:$0xff]  ;;  %v689_v51 = vld [vmem:[%s1783_s15 + $0x150] sm:$0xff] }
  0x28   : > { %v652_v46 = vld [vmem:[%s1783_s15 + $0x28] sm:$0xff]  ;;  %v653_v52 = vld [vmem:[%s1783_s15 + $0x30] sm:$0xff]  ;;  %v655_v56 = vld [vmem:[%s1783_s15 + $0x40] sm:$0xff] }
  0x29   : > { %1369 = vmatmul.mubr.msk.f32.gmra.mrb[4].mxu0 %vm325_vm0, %v283_v39  ;;  %1496 = vmatpush1.bf16.msra.mxu1 %v1445_v40  ;;  %v648_v39 = vld [vmem:[%s1783_s15 + $0x8] sm:$0xff]  ;;  %v694_v57 = vld [vmem:[%s1783_s15 + $0x178] sm:$0xff]  ;;  %v697_v4 = vld [vmem:[%s1783_s15 + $0x190] sm:$0xff] }
  0x2a   : > { %1434 = vmatpush1.bf16.msra.mxu0 %v1433_v21  ;;  %1371 = vmatprep.mubr.msk.f32.mxu0 %vm325_vm0, %v284_v43  ;;  %v301_v21 = vld [vmem:[%s1752_s12 + $0xb8] sm:$0xff]  ;;  %v696_v61 = vld [vmem:[%s1783_s15 + $0x188] sm:$0xff]  ;;  %v699_v8 = vld [vmem:[%s1783_s15 + $0x1a0] sm:$0xff] }
  0x2b   : > { %1481 = vmatprep.subr.bf16.mxu1 %v1613_v3  ;;  %1435 = vmatprep.subr.bf16.mxu0 %v1613_v3  ;;  %v650_v43 = vld [vmem:[%s1783_s15 + $0x18] sm:$0xff]  ;;  %v660_v62 = vld [vmem:[%s1783_s15 + $0x68] sm:$0xff]  ;;  %v663_v9 = vld [vmem:[%s1783_s15 + $0x80] sm:$0xff] }
  0x2c   : > { %v662_v2 = vld [vmem:[%s1783_s15 + $0x78] sm:$0xff]  ;;  %v665_v13 = vld [vmem:[%s1783_s15 + $0x90] sm:$0xff]  ;;  %v704_v14 = vld [vmem:[%s1783_s15 + $0x1c8] sm:$0xff] }
  0x2d   : > { %1372 = vmatmul.mubr.msk.f32.gmra.mrb[6].mxu0 %vm325_vm0, %v285_v44  ;;  %1497 = vmatpush1.bf16.msra.mxu1 %v1448_v45  ;;  %v649_v44 = vld [vmem:[%s1783_s15 + $0x10] sm:$0xff]  ;;  %v670_v18 = vld [vmem:[%s1783_s15 + $0xb8] sm:$0xff] }
  0x2e   : > { %1437 = vmatpush1.bf16.msra.mxu0 %v1436_v25  ;;  %1374 = vmatprep.mubr.msk.f32.mxu0 %vm325_vm0, %v286_v48  ;;  %v303_v25 = vld [vmem:[%s1752_s12 + $0xc8] sm:$0xff]  ;;  %v651_v48 = vld [vmem:[%s1783_s15 + $0x20] sm:$0xff]  ;;  %v706_v19 = vld [vmem:[%s1783_s15 + $0x1d8] sm:$0xff] }
  0x2f   : > { %1482 = vmatprep.subr.bf16.mxu1 %v1613_v3  ;;  %1438 = vmatprep.subr.bf16.mxu0 %v1613_v3 }
  0x31   : > { %1375 = vmatmul.mubr.msk.f32.gmra.mrb[8].mxu0 %vm325_vm0, %v287_v49  ;;  %1498 = vmatpush1.bf16.msra.mxu1 %v1451_v50  ;;  %v690_v49 = vld [vmem:[%s1783_s15 + $0x158] sm:$0xff] }
  0x32   : > { %1440 = vmatpush1.bf16.msra.mxu0 %v1439_v29  ;;  %1377 = vmatprep.mubr.msk.f32.mxu0 %vm325_vm0, %v288_v53  ;;  %v305_v29 = vld [vmem:[%s1752_s12 + $0xd8] sm:$0xff]  ;;  %v692_v53 = vld [vmem:[%s1783_s15 + $0x168] sm:$0xff]  ;;  %s1553_s12 = sshll.u32 %s1615_s16, 4  ;;  %s1554_s12 = int_to_ptr.vmem [resolvable:$false] %s1553_s12 }
  0x33   : > { %1483 = vmatprep.subr.bf16.mxu1 %v1613_v3  ;;  %1441 = vmatprep.subr.bf16.mxu0 %v1613_v3  ;;  %p1556_p0 = scmp.lt.s32.totalorder %s2271_s9, %s1554_s12 }
  0x35   : > { %1378 = vmatmul.mubr.msk.f32.gmra.mrb[10].mxu0 %vm325_vm0, %v289_v54  ;;  %1499 = vmatpush1.bf16.msra.mxu1 %v1454_v55  ;;  %v656_v54 = vld [vmem:[%s1783_s15 + $0x48] sm:$0xff] }
  0x36   : > { %1443 = vmatpush1.bf16.msra.mxu0 %v1442_v34  ;;  %1380 = vmatprep.mubr.msk.f32.mxu0 %vm325_vm0, %v290_v58  ;;  %v682_v34 = vld [vmem:[%s1783_s15 + $0x118] sm:$0xff] }
  0x37   : > { %1484 = vmatprep.subr.bf16.mxu1 %v1613_v3  ;;  %1444 = vmatprep.subr.bf16.mxu0 %v1613_v3  ;;  %v658_v58 = vld [vmem:[%s1783_s15 + $0x58] sm:$0xff] }
  0x39   : > { %1381 = vmatmul.mubr.msk.f32.gmra.mrb[12].mxu0 %vm325_vm0, %v291_v59  ;;  %1500 = vmatpush1.bf16.msra.mxu1 %v1457_v60  ;;  %v693_v59 = vld [vmem:[%s1783_s15 + $0x170] sm:$0xff] }
  0x3a   : > { %1446 = vmatpush1.bf16.msra.mxu0 %v1445_v40  ;;  %1383 = vmatprep.mubr.msk.f32.mxu0 %vm325_vm0, %v292_v63  ;;  %v683_v40 = vld [vmem:[%s1783_s15 + $0x120] sm:$0xff] }
  0x3b   : > { %1485 = vmatprep.subr.bf16.mxu1 %v1613_v3  ;;  %1447 = vmatprep.subr.bf16.mxu0 %v1613_v3  ;;  %v695_v63 = vld [vmem:[%s1783_s15 + $0x180] sm:$0xff] }
  0x3d   : > { %1384 = vmatmul.mubr.msk.f32.gmra.mrb[14].mxu0 %vm325_vm0, %v293_v0  ;;  %1501 = vmatpush1.bf16.msra.mxu1 %v1460_v1  ;;  %v659_v0 = vld [vmem:[%s1783_s15 + $0x60] sm:$0xff] }
  0x3e   : > { %1449 = vmatpush1.bf16.msra.mxu0 %v1448_v45  ;;  %1386 = vmatprep.mubr.msk.f32.mxu0 %vm325_vm0, %v294_v5  ;;  %v688_v45 = vld [vmem:[%s1783_s15 + $0x148] sm:$0xff]  ;;  %v661_v5 = vld [vmem:[%s1783_s15 + $0x70] sm:$0xff] }
  0x3f   : > { %1486 = vmatprep.subr.bf16.mxu1 %v1613_v3  ;;  %1450 = vmatprep.subr.bf16.mxu0 %v1613_v3 }
  0x41   : > { %1387 = vmatmul.mubr.msk.f32.gmra.mrb[16].mxu0 %vm325_vm0, %v295_v6  ;;  %1502 = vmatpush1.bf16.msra.mxu1 %v1463_v7  ;;  %v700_v6 = vld [vmem:[%s1783_s15 + $0x1a8] sm:$0xff] }
  0x42   : > { %1452 = vmatpush1.bf16.msra.mxu0 %v1451_v50  ;;  %1389 = vmatprep.mubr.msk.f32.mxu0 %vm325_vm0, %v296_v10  ;;  %v654_v50 = vld [vmem:[%s1783_s15 + $0x38] sm:$0xff] }
  0x43   : > { %1487 = vmatprep.subr.bf16.mxu1 %v1613_v3  ;;  %1453 = vmatprep.subr.bf16.mxu0 %v1613_v3  ;;  %v702_v10 = vld [vmem:[%s1783_s15 + $0x1b8] sm:$0xff] }
  0x45   : > { %1390 = vmatmul.mubr.msk.f32.gmra.mrb[18].mxu0 %vm325_vm0, %v297_v11  ;;  %1503 = vmatpush1.bf16.msra.mxu1 %v1466_v12  ;;  %v666_v11 = vld [vmem:[%s1783_s15 + $0x98] sm:$0xff] }
  0x46   : > { %1455 = vmatpush1.bf16.msra.mxu0 %v1454_v55  ;;  %1392 = vmatprep.mubr.msk.f32.mxu0 %vm325_vm0, %v298_v15  ;;  %v691_v55 = vld [vmem:[%s1783_s15 + $0x160] sm:$0xff]  ;;  %v668_v15 = vld [vmem:[%s1783_s15 + $0xa8] sm:$0xff] }
  0x47   : > { %1488 = vmatprep.subr.bf16.mxu1 %v1613_v3  ;;  %1456 = vmatprep.subr.bf16.mxu0 %v1613_v3 }
  0x49   : > { %1393 = vmatmul.mubr.msk.f32.gmra.mrb[20].mxu0 %vm325_vm0, %v299_v16  ;;  %1504 = vmatpush1.bf16.msra.mxu1 %v1469_v17  ;;  %v703_v16 = vld [vmem:[%s1783_s15 + $0x1c0] sm:$0xff] }
  0x4a   : > { %1458 = vmatpush1.bf16.msra.mxu0 %v1457_v60  ;;  %1395 = vmatprep.mubr.msk.f32.mxu0 %vm325_vm0, %v300_v20  ;;  %v657_v60 = vld [vmem:[%s1783_s15 + $0x50] sm:$0xff] }
  0x4b   : > { %1489 = vmatprep.subr.bf16.mxu1 %v1613_v3  ;;  %1459 = vmatprep.subr.bf16.mxu0 %v1613_v3  ;;  %v669_v20 = vld [vmem:[%s1783_s15 + $0xb0] sm:$0xff] }
  0x4d   : > { %1396 = vmatmul.mubr.msk.f32.gmra.mrb[22].mxu0 %vm325_vm0, %v301_v21  ;;  %1505 = vmatpush1.bf16.msra.mxu1 %v1472_v22  ;;  %v705_v21 = vld [vmem:[%s1783_s15 + $0x1d0] sm:$0xff] }
  0x4e   : > { %1461 = vmatpush1.bf16.msra.mxu0 %v1460_v1  ;;  %1398 = vmatprep.mubr.msk.f32.mxu0 %vm325_vm0, %v302_v23  ;;  %v698_v1 = vld [vmem:[%s1783_s15 + $0x198] sm:$0xff]  ;;  %v708_v23 = vld [vmem:[%s1783_s15 + $0x1e8] sm:$0xff] }
  0x4f   : > { %1462 = vmatprep.subr.bf16.mxu0 %v1613_v3 }
  0x50   : > { %885 = vmatmul.mubr.f32.vlgmr.msra.gmra.mrb[0].mxu1 %v675_v24  ;;  %v671_v24 = vld [vmem:[%s1783_s15 + $0xc0] sm:$0xff] }
  0x51   : > { %1399 = vmatmul.mubr.msk.f32.gmra.mrb[24].mxu0 %vm325_vm0, %v303_v25  ;;  %889 = vmatprep.mubr.f32.mxu1 %v678_v26  ;;  %v707_v25 = vld [vmem:[%s1783_s15 + $0x1e0] sm:$0xff]  ;;  %v674_v26 = vld [vmem:[%s1783_s15 + $0xd8] sm:$0xff] }
  0x52   : > { %1464 = vmatpush1.bf16.msra.mxu0 %v1463_v7  ;;  %1401 = vmatprep.mubr.msk.f32.mxu0 %vm325_vm0, %v304_v27  ;;  %v664_v7 = vld [vmem:[%s1783_s15 + $0x88] sm:$0xff]  ;;  %v710_v27 = vld [vmem:[%s1783_s15 + $0x1f8] sm:$0xff] }
  0x53   : > { %1465 = vmatprep.subr.bf16.mxu0 %v1613_v3 }
  0x54   : > { %890 = vmatmul.mubr.f32.gmra.mrb[2].mxu1 %v677_v28  ;;  %v673_v28 = vld [vmem:[%s1783_s15 + $0xd0] sm:$0xff] }
  0x55   : > { %1402 = vmatmul.mubr.msk.f32.gmra.mrb[26].mxu0 %vm325_vm0, %v305_v29  ;;  %894 = vmatprep.mubr.f32.mxu1 %v680_v30  ;;  %v709_v29 = vld [vmem:[%s1783_s15 + $0x1f0] sm:$0xff] }
  0x56   : > { %1467 = vmatpush1.bf16.msra.mxu0 %v1466_v12  ;;  %1404 = vmatprep.mubr.msk.f32.mxu0 %vm325_vm0, %v306_v31  ;;  %v701_v12 = vld [vmem:[%s1783_s15 + $0x1b0] sm:$0xff] }
  0x57   : > { %1468 = vmatprep.subr.bf16.mxu0 %v1613_v3 }
  0x58   : > { %895 = vmatmul.mubr.f32.gmra.mrb[4].mxu1 %v679_v32 }
  0x59   : > { %1405 = vmatmul.mubr.msk.f32.gmra.mrb[28].mxu0 %vm325_vm0, %v307_v33  ;;  %899 = vmatprep.mubr.f32.mxu1 %v682_v34 }
  0x5a   : > { %1470 = vmatpush1.bf16.msra.mxu0 %v1469_v17  ;;  %1407 = vmatprep.mubr.msk.f32.mxu0 %vm325_vm0, %v308_v35  ;;  %v667_v17 = vld [vmem:[%s1783_s15 + $0xa0] sm:$0xff] }
  0x5b   : > { %1471 = vmatprep.subr.bf16.mxu0 %v1613_v3  ;;  %v685_v3 = vld [vmem:[%s1783_s15 + $0x130] sm:$0xff] }
  0x5c   : > { %900 = vmatmul.mubr.f32.gmra.mrb[6].mxu1 %v681_v36 }
  0x5d   : > { %1408 = vmatmul.mubr.msk.f32.gmra.mrb[30].mxu0 %vm325_vm0, %v309_v37  ;;  %904 = vmatprep.mubr.f32.mxu1 %v684_v38 }
  0x5e   : > { %1473 = vmatpush1.bf16.msra.mxu0 %v1472_v22  ;;  %814 = vmatprep.mubr.f32.mxu0 %v648_v39  ;;  %v672_v22 = vld [vmem:[%s1783_s15 + $0xc8] sm:$0xff]  ;;  %s1555_s15 = scalar_lea.vmem %s1554_s12, 8192 }
  0x5f   : > { %p1557_p1 = scmp.lt.s32.totalorder %s1555_s15, %s1549_s14 }
  0x60   : > { %905 = vmatmul.mubr.f32.gmra.mrb[8].mxu1 %v683_v40  ;;  %v2019_v40 = vld [vmem:[%s2323_s4] ss:$0 sm:$0xff] }
  0x61   : > { %815 = vmatmul.mubr.f32.vlgmr.msra.gmra.mrb[32].mxu0 %v647_v41  ;;  %909 = vmatprep.mubr.f32.mxu1 %v686_v42  ;;  %p1558_p2 = por %p1557_p1, %p1556_p0 }
  0x62   : > { %819 = vmatprep.mubr.f32.mxu0 %v650_v43 }
  0x63   : > { %p1559_p3 = pnand %p1558_p2, %p1552_p13 }
  0x64   : > { %910 = vmatmul.mubr.f32.gmra.mrb[10].mxu1 %v685_v3 }
  0x65   : > { %820 = vmatmul.mubr.f32.gmra.mrb[34].mxu0 %v649_v44  ;;  %914 = vmatprep.mubr.f32.mxu1 %v688_v45 }
  0x66   : > { %824 = vmatprep.mubr.f32.mxu0 %v652_v46 }
  0x68   : > { %915 = vmatmul.mubr.f32.gmra.mrb[12].mxu1 %v687_v47 }
  0x69   : > { %825 = vmatmul.mubr.f32.gmra.mrb[36].mxu0 %v651_v48  ;;  %919 = vmatprep.mubr.f32.mxu1 %v690_v49 }
  0x6a   : > { %829 = vmatprep.mubr.f32.mxu0 %v654_v50 }
  0x6c   : > { %920 = vmatmul.mubr.f32.gmra.mrb[14].mxu1 %v689_v51 }
  0x6d   : > { %830 = vmatmul.mubr.f32.gmra.mrb[38].mxu0 %v653_v52  ;;  %924 = vmatprep.mubr.f32.mxu1 %v692_v53 }
  0x6e   : > { %834 = vmatprep.mubr.f32.mxu0 %v656_v54 }
  0x70   : > { %925 = vmatmul.mubr.f32.gmra.mrb[16].mxu1 %v691_v55 }
  0x71   : > { %835 = vmatmul.mubr.f32.gmra.mrb[40].mxu0 %v655_v56  ;;  %929 = vmatprep.mubr.f32.mxu1 %v694_v57  ;;  %v2055_v57 = vld [vmem:[%s2324_s5] ss:$0 sm:$0xff] }
  0x72   : > { %839 = vmatprep.mubr.f32.mxu0 %v658_v58 }
  0x74   : > { %930 = vmatmul.mubr.f32.gmra.mrb[18].mxu1 %v693_v59 }
  0x75   : > { %840 = vmatmul.mubr.f32.gmra.mrb[42].mxu0 %v657_v60  ;;  %934 = vmatprep.mubr.f32.mxu1 %v696_v61 }
  0x76   : > { %844 = vmatprep.mubr.f32.mxu0 %v660_v62 }
  0x78   : > { %935 = vmatmul.mubr.f32.gmra.mrb[20].mxu1 %v695_v63 }
  0x79   : > { %845 = vmatmul.mubr.f32.gmra.mrb[44].mxu0 %v659_v0  ;;  %939 = vmatprep.mubr.f32.mxu1 %v698_v1 }
  0x7a   : > { %849 = vmatprep.mubr.f32.mxu0 %v662_v2 }
  0x7c   : > { %940 = vmatmul.mubr.f32.gmra.mrb[22].mxu1 %v697_v4 }
  0x7d   : > { %850 = vmatmul.mubr.f32.gmra.mrb[46].mxu0 %v661_v5  ;;  %944 = vmatprep.mubr.f32.mxu1 %v700_v6 }
  0x7e   : > { %854 = vmatprep.mubr.f32.mxu0 %v664_v7 }
  0x80   : > { %945 = vmatmul.mubr.f32.gmra.mrb[24].mxu1 %v699_v8 }
  0x81   : > { %855 = vmatmul.mubr.f32.gmra.mrb[48].mxu0 %v663_v9  ;;  %949 = vmatprep.mubr.f32.mxu1 %v702_v10 }
  0x82   : > { %859 = vmatprep.mubr.f32.mxu0 %v666_v11 }
  0x84   : > { %950 = vmatmul.mubr.f32.gmra.mrb[26].mxu1 %v701_v12 }
  0x85   : > { %860 = vmatmul.mubr.f32.gmra.mrb[50].mxu0 %v665_v13  ;;  %954 = vmatprep.mubr.f32.mxu1 %v704_v14 }
  0x86   : > { %864 = vmatprep.mubr.f32.mxu0 %v668_v15 }
  0x88   : > { %955 = vmatmul.mubr.f32.gmra.mrb[28].mxu1 %v703_v16 }
  0x89   : > { %865 = vmatmul.mubr.f32.gmra.mrb[52].mxu0 %v667_v17  ;;  %959 = vmatprep.mubr.f32.mxu1 %v706_v19 }
  0x8a   : > { %869 = vmatprep.mubr.f32.mxu0 %v670_v18 }
  0x8c   : > { %960 = vmatmul.mubr.f32.gmra.mrb[30].mxu1 %v705_v21 }
  0x8d   : > { %870 = vmatmul.mubr.f32.gmra.mrb[54].mxu0 %v669_v20  ;;  %964 = vmatprep.mubr.f32.mxu1 %v708_v23 }
  0x8e   : > { %874 = vmatprep.mubr.f32.mxu0 %v672_v22 }
  0x90   : > { %965 = vmatmul.mubr.f32.gmra.mrb[32].mxu1 %v707_v25 }
  0x91   : > { %875 = vmatmul.mubr.f32.gmra.mrb[56].mxu0 %v671_v24  ;;  %969 = vmatprep.mubr.f32.mxu1 %v710_v27 }
  0x92   : > { %879 = vmatprep.mubr.f32.mxu0 %v674_v26 }
  0x94   : > { %970 = vmatmul.mubr.f32.gmra.mrb[34].mxu1 %v709_v29 }
  0x95   : > { %880 = vmatmul.mubr.f32.gmra.mrb[58].mxu0 %v673_v28 }
  0xf4   : > { %v1996_v30 = vpop.f32.mrb[0].mxu0 }
  0xf5   : > { %v1998_v31 = vpop.f32.mrb[1].mxu0 }
  0xf8   : > { %v2000_v32 = vpop.f32.mrb[2].mxu0 }
  0xf9   : > { %v2002_v33 = vpop.f32.mrb[3].mxu0 }
  0xfc   : > { %v2004_v34 = vpop.f32.mrb[4].mxu0 }
  0xfd   : > { %v2006_v35 = vpop.f32.mrb[5].mxu0 }
 0x100   : > { %v2008_v36 = vpop.f32.mrb[6].mxu0 }
 0x101   : > { %v2010_v37 = vpop.f32.mrb[7].mxu0 }
 0x104   : > { %v2012_v38 = vpop.f32.mrb[8].mxu0 }
 0x105   : > { %v2014_v39 = vpop.f32.mrb[9].mxu0 }
 0x108   : > { %v1379_v41 = vpop.f32.mrb[10].mxu0 }
 0x109   : > { %v2022_v42 = vadd.f32 %v1379_v41, %v2019_v40  ;;  %v2024_v43 = vpop.f32.mrb[11].mxu0 }
 0x10c   : > { %v1382_v3 = vpop.f32.mrb[12].mxu0 }
 0x10d   : > { %v2027_v44 = vadd.f32 %v1382_v3, %v2019_v40  ;;  %v548_v45 = vpop.f32.mrb[13].mxu0 }
 0x10e   : > { %v2030_v46 = vadd.f32 %v2019_v40, %v548_v45 }
 0x110   : > { %v2032_v47 = vpop.f32.mrb[14].mxu0 }
 0x111   : > { %v2034_v48 = vpop.f32.mrb[15].mxu0 }
 0x114   : > { %v2036_v49 = vpop.f32.mrb[16].mxu0 }
 0x115   : > { %v2038_v50 = vpop.f32.mrb[17].mxu0 }
 0x118   : > { %v2040_v51 = vpop.f32.mrb[18].mxu0 }
 0x119   : > { %v2042_v52 = vpop.f32.mrb[19].mxu0 }
 0x11c   : > { %v2044_v53 = vpop.f32.mrb[20].mxu0 }
 0x11d   : > { %v2046_v54 = vpop.f32.mrb[21].mxu0 }
 0x120   : > { %v2048_v55 = vpop.f32.mrb[22].mxu0 }
 0x121   : > { %v2050_v56 = vpop.f32.mrb[23].mxu0 }
 0x123   : > { %v886_v58 = vpop.f32.mrb[0].mxu1 }
 0x124   : > { %v2057_v59 = vpop.f32.mrb[24].mxu0  ;;  %v887_v60 = vadd.f32 %v2055_v57, %v886_v58  ;;  %v888_v62 = vpop.f32.mrb[1].mxu1 }
 0x125   : > { %v2060_v61 = vpop.f32.mrb[25].mxu0 }
 0x126   : > { %1035 = vrot.lane.b32.xlu0 %v887_v60, %s1614_s19 }
 0x127   : > { %v891_v63 = vpop.f32.mrb[2].mxu1 }
 0x128   : > { %v2063_v0 = vpop.f32.mrb[26].mxu0  ;;  %v892_v1 = vadd.f32 %v2055_v57, %v891_v63  ;;  %v893_v4 = vpop.f32.mrb[3].mxu1 }
 0x129   : > { %v2066_v2 = vpop.f32.mrb[27].mxu0 }
 0x12a   : > { %1037 = vrot.lane.b32.xlu1 %v892_v1, %s1614_s19 }
 0x12b   : > { %v896_v5 = vpop.f32.mrb[4].mxu1 }
 0x12c   : > { %v2069_v6 = vpop.f32.mrb[28].mxu0  ;;  %v897_v7 = vadd.f32 %v2055_v57, %v896_v5  ;;  %v898_v9 = vpop.f32.mrb[5].mxu1 }
 0x12d   : > { %v2072_v8 = vpop.f32.mrb[29].mxu0 }
 0x12e   : > { %1039 = vrot.lane.b32.xlu0 %v897_v7, %s1614_s19 }
 0x12f   : > { %v901_v10 = vpop.f32.mrb[6].mxu1 }
 0x130   : > { %v1409_v11 = vpop.f32.mrb[30].mxu0  ;;  %v902_v12 = vadd.f32 %v2055_v57, %v901_v10  ;;  %v903_v15 = vpop.f32.mrb[7].mxu1 }
 0x131   : > { %v2077_v13 = vadd.f32 %v1409_v11, %v2019_v40  ;;  %v638_v14 = vpop.f32.mrb[31].mxu0 }
 0x132   : > { %v2080_v16 = vadd.f32 %v2019_v40, %v638_v14  ;;  %1041 = vrot.lane.b32.xlu1 %v902_v12, %s1614_s19 }
 0x133   : > { %v906_v17 = vpop.f32.mrb[8].mxu1 }
 0x134   : > { %v816_v18 = vpop.f32.mrb[32].mxu0  ;;  %v907_v19 = vadd.f32 %v2055_v57, %v906_v17  ;;  %v908_v21 = vpop.f32.mrb[9].mxu1 }
 0x135   : > { %v818_v20 = vpop.f32.mrb[33].mxu0  ;;  %v817_v24 = vadd.f32 %v2055_v57, %v816_v18 }
 0x136   : > { %1043 = vrot.lane.b32.xlu0 %v907_v19, %s1614_s19 }
 0x137   : > { %v911_v22 = vpop.f32.mrb[10].mxu1 }
 0x138   : > { %v821_v23 = vpop.f32.mrb[34].mxu0  ;;  %v912_v25 = vadd.f32 %v2055_v57, %v911_v22  ;;  %v913_v27 = vpop.f32.mrb[11].mxu1 }
 0x139   : > { %v823_v26 = vpop.f32.mrb[35].mxu0  ;;  %v822_v41 = vadd.f32 %v2055_v57, %v821_v23 }
 0x13a   : > { %1045 = vrot.lane.b32.xlu1 %v912_v25, %s1614_s19  ;;  %1007 = vrot.lane.b32.xlu0 %v817_v24, %s1614_s19 }
 0x13b   : > { %v916_v29 = vpop.f32.mrb[12].mxu1 }
 0x13c   : > { %v826_v28 = vpop.f32.mrb[36].mxu0  ;;  %v918_v58 = vpop.f32.mrb[13].mxu1  ;;  %v917_v63 = vadd.f32 %v2055_v57, %v916_v29 }
 0x13d   : > { %v827_v3 = vadd.f32 %v2055_v57, %v826_v28  ;;  %v828_v45 = vpop.f32.mrb[37].mxu0 }
 0x13e   : > { %1009 = vrot.lane.b32.xlu0 %v822_v41, %s1614_s19 }
 0x13f   : > { %1011 = vrot.lane.b32.xlu1 %v827_v3, %s1614_s19  ;;  %v921_v62 = vpop.f32.mrb[14].mxu1 }
 0x140   : > { %v831_v60 = vpop.f32.mrb[38].mxu0  ;;  %v922_v1 = vadd.f32 %v2055_v57, %v921_v62  ;;  %v923_v5 = vpop.f32.mrb[15].mxu1 }
 0x141   : > { %v833_v4 = vpop.f32.mrb[39].mxu0  ;;  %v832_v10 = vadd.f32 %v2055_v57, %v831_v60 }
 0x142   : > { %1047 = vrot.lane.b32.xlu0 %v917_v63, %s1614_s19 }
 0x143   : > { %1049 = vrot.lane.b32.xlu1 %v922_v1, %s1614_s19  ;;  %v926_v7 = vpop.f32.mrb[16].mxu1 }
 0x144   : > { %v836_v9 = vpop.f32.mrb[40].mxu0  ;;  %v927_v11 = vadd.f32 %v2055_v57, %v926_v7  ;;  %v928_v14 = vpop.f32.mrb[17].mxu1 }
 0x145   : > { %v838_v12 = vpop.f32.mrb[41].mxu0  ;;  %v837_v18 = vadd.f32 %v2055_v57, %v836_v9 }
 0x146   : > { %1051 = vrot.lane.b32.xlu0 %v927_v11, %s1614_s19 }
 0x147   : > { %1013 = vrot.lane.b32.xlu1 %v832_v10, %s1614_s19  ;;  %v931_v17 = vpop.f32.mrb[18].mxu1 }
 0x148   : > { %v841_v15 = vpop.f32.mrb[42].mxu0  ;;  %v932_v19 = vadd.f32 %v2055_v57, %v931_v17  ;;  %v933_v21 = vpop.f32.mrb[19].mxu1 }
 0x149   : > { %v843_v20 = vpop.f32.mrb[43].mxu0  ;;  %v842_v24 = vadd.f32 %v2055_v57, %v841_v15 }
 0x14a   : > { %1015 = vrot.lane.b32.xlu0 %v837_v18, %s1614_s19 }
 0x14b   : > { %1053 = vrot.lane.b32.xlu1 %v932_v19, %s1614_s19  ;;  %v936_v22 = vpop.f32.mrb[20].mxu1 }
 0x14c   : > { %v846_v23 = vpop.f32.mrb[44].mxu0  ;;  %v937_v25 = vadd.f32 %v2055_v57, %v936_v22  ;;  %v938_v27 = vpop.f32.mrb[21].mxu1 }
 0x14d   : > { %v848_v26 = vpop.f32.mrb[45].mxu0  ;;  %v847_v41 = vadd.f32 %v2055_v57, %v846_v23 }
 0x14e   : > { %1055 = vrot.lane.b32.xlu0 %v937_v25, %s1614_s19 }
 0x14f   : > { %1017 = vrot.lane.b32.xlu1 %v842_v24, %s1614_s19  ;;  %v941_v29 = vpop.f32.mrb[22].mxu1 }
 0x150   : > { %v851_v28 = vpop.f32.mrb[46].mxu0  ;;  %v942_v3 = vadd.f32 %v2055_v57, %v941_v29  ;;  %v943_v58 = vpop.f32.mrb[23].mxu1 }
 0x151   : > { %v853_v45 = vpop.f32.mrb[47].mxu0  ;;  %v852_v63 = vadd.f32 %v2055_v57, %v851_v28 }
 0x152   : > { %1019 = vrot.lane.b32.xlu0 %v847_v41, %s1614_s19 }
 0x153   : > { %1057 = vrot.lane.b32.xlu1 %v942_v3, %s1614_s19  ;;  %v946_v60 = vpop.f32.mrb[24].mxu1 }
 0x154   : > { %v856_v62 = vpop.f32.mrb[48].mxu0  ;;  %v947_v1 = vadd.f32 %v2055_v57, %v946_v60  ;;  %v948_v5 = vpop.f32.mrb[25].mxu1 }
 0x155   : > { %v858_v4 = vpop.f32.mrb[49].mxu0  ;;  %v857_v10 = vadd.f32 %v2055_v57, %v856_v62 }
 0x156   : > { %1059 = vrot.lane.b32.xlu0 %v947_v1, %s1614_s19 }
 0x157   : > { %1021 = vrot.lane.b32.xlu1 %v852_v63, %s1614_s19  ;;  %v951_v9 = vpop.f32.mrb[26].mxu1 }
 0x158   : > { %v861_v7 = vpop.f32.mrb[50].mxu0  ;;  %v952_v11 = vadd.f32 %v2055_v57, %v951_v9  ;;  %v953_v14 = vpop.f32.mrb[27].mxu1  ;;  %v559_v9 = vadd.f32 %v2019_v40, %v2034_v48  ;;  %v569_v48 = vadd.f32 %v2019_v40, %v2038_v50  ;;  %v489_v50 = vadd.f32 %v2019_v40, %v1998_v31 }
 0x159   : > { %v863_v12 = vpop.f32.mrb[51].mxu0  ;;  %v862_v18 = vadd.f32 %v2055_v57, %v861_v7 }
 0x15a   : > { %1023 = vrot.lane.b32.xlu0 %v857_v10, %s1614_s19 }
 0x15b   : > { %1061 = vrot.lane.b32.xlu1 %v952_v11, %s1614_s19  ;;  %v956_v15 = vpop.f32.mrb[28].mxu1 }
 0x15c   : > { %v866_v17 = vpop.f32.mrb[52].mxu0  ;;  %v957_v19 = vadd.f32 %v2055_v57, %v956_v15  ;;  %v958_v21 = vpop.f32.mrb[29].mxu1 }
 0x15d   : > { %v868_v20 = vpop.f32.mrb[53].mxu0  ;;  %v867_v24 = vadd.f32 %v2055_v57, %v866_v17 }
 0x15e   : > { %1063 = vrot.lane.b32.xlu0 %v957_v19, %s1614_s19 }
 0x15f   : > { %1025 = vrot.lane.b32.xlu1 %v862_v18, %s1614_s19  ;;  %v961_v23 = vpop.f32.mrb[30].mxu1  ;;  %v574_v18 = vadd.f32 %v2036_v49, %v2019_v40 }
 0x160   : > { %v871_v22 = vpop.f32.mrb[54].mxu0  ;;  %v962_v25 = vadd.f32 %v2055_v57, %v961_v23  ;;  %v963_v27 = vpop.f32.mrb[31].mxu1  ;;  %v584_v23 = vadd.f32 %v2040_v51, %v2019_v40 }
 0x161   : > { %v873_v26 = vpop.f32.mrb[55].mxu0  ;;  %v872_v41 = vadd.f32 %v2055_v57, %v871_v22  ;;  %v499_v27 = vadd.f32 %v2019_v40, %v2002_v33 }
 0x162   : > { %1027 = vrot.lane.b32.xlu0 %v867_v24, %s1614_s19 }
 0x163   : > { %1065 = vrot.lane.b32.xlu1 %v962_v25, %s1614_s19  ;;  %v966_v29 = vpop.f32.mrb[32].mxu1 }
 0x164   : > { %v876_v28 = vpop.f32.mrb[56].mxu0  ;;  %v968_v58 = vpop.f32.mrb[33].mxu1  ;;  %v967_v60 = vadd.f32 %v2055_v57, %v966_v29 }
 0x165   : > { %v877_v3 = vadd.f32 %v2055_v57, %v876_v28  ;;  %v878_v45 = vpop.f32.mrb[57].mxu0 }
 0x167   : > { %1029 = vrot.lane.b32.xlu1 %v872_v41, %s1614_s19  ;;  %1031 = vrot.lane.b32.xlu0 %v877_v3, %s1614_s19  ;;  %v971_v63 = vpop.f32.mrb[34].mxu1  ;;  %v594_v41 = vadd.f32 %v2044_v53, %v2019_v40  ;;  %v589_v3 = vadd.f32 %v2019_v40, %v2046_v54 }
 0x168   : > { %v881_v62 = vpop.f32.mrb[58].mxu0  ;;  %v973_v5 = vpop.f32.mrb[35].mxu1  ;;  %v972_v7 = vadd.f32 %v2055_v57, %v971_v63 }
 0x169   : > { %v882_v1 = vadd.f32 %v2055_v57, %v881_v62  ;;  %v883_v4 = vpop.f32.mrb[59].mxu0  ;;  %v564_v57 = vadd.f32 %v2032_v47, %v2019_v40  ;;  %v579_v47 = vadd.f32 %v2019_v40, %v2042_v52  ;;  %v494_v52 = vadd.f32 %v1996_v30, %v2019_v40 }
 0x16a   : > { %v599_v62 = vadd.f32 %v2019_v40, %v2050_v56  ;;  %v509_v4 = vadd.f32 %v2019_v40, %v2006_v35  ;;  %v604_v5 = vadd.f32 %v2048_v55, %v2019_v40 }
 0x16b   : > { %1033 = vrot.lane.b32.xlu1 %v882_v1, %s1614_s19  ;;  %1067 = vrot.lane.b32.xlu0 %v967_v60, %s1614_s19  ;;  %v504_v60 = vadd.f32 %v2000_v32, %v2019_v40 }
 0x16f   : > { %1069 = vrot.lane.b32.xlu1 %v972_v7, %s1614_s19 }
 0x198   : > { %v1036_v10 = vpop.permute.xlu0 %1035 }
 0x199   : > { %v1117_v11 = vsel %vm325_vm0, %v559_v9, %v1036_v10  ;;  %v514_v10 = vadd.f32 %v2004_v34, %v2019_v40 }
 0x19a   : > { %1149 = vst [vmem:[%s2145_s28 + $0x70] sm:$0xff] %v1117_v11  ;;  %v609_v11 = vadd.f32 %v2019_v40, %v2060_v61 }
 0x19c   : > { %v1038_v12 = vpop.permute.xlu1 %1037 }
 0x19d   : > { %v1118_v14 = vsel %vm325_vm0, %v564_v57, %v1038_v12 }
 0x19e   : > { %1150 = vst [vmem:[%s2145_s28 + $0x78] sm:$0xff] %v1118_v14  ;;  %v519_v14 = vadd.f32 %v2019_v40, %v2010_v37 }
 0x1a0   : > { %v1040_v15 = vpop.permute.xlu0 %1039 }
 0x1a1   : > { %v1119_v17 = vsel %vm325_vm0, %v569_v48, %v1040_v15  ;;  %v614_v48 = vadd.f32 %v2057_v59, %v2019_v40 }
 0x1a2   : > { %1151 = vst [vmem:[%s2145_s28 + $0x80] sm:$0xff] %v1119_v17 }
 0x1a4   : > { %v1042_v19 = vpop.permute.xlu1 %1041 }
 0x1a5   : > { %v1120_v20 = vsel %vm325_vm0, %v574_v18, %v1042_v19  ;;  %v524_v18 = vadd.f32 %v2008_v36, %v2019_v40  ;;  %v619_v19 = vadd.f32 %v2019_v40, %v2066_v2 }
 0x1a6   : > { %1152 = vst [vmem:[%s2145_s28 + $0x88] sm:$0xff] %v1120_v20 }
 0x1a8   : > { %v1044_v21 = vpop.permute.xlu0 %1043 }
 0x1a9   : > { %v1121_v22 = vsel %vm325_vm0, %v579_v47, %v1044_v21  ;;  %v529_v21 = vadd.f32 %v2019_v40, %v2014_v39 }
 0x1aa   : > { %1153 = vst [vmem:[%s2145_s28 + $0x90] sm:$0xff] %v1121_v22  ;;  %v624_v22 = vadd.f32 %v2063_v0, %v2019_v40 }
 0x1ac   : > { %v1046_v49 = vpop.permute.xlu1 %1045  ;;  %v1008_v24 = vpop.permute.xlu0 %1007 }
 0x1ad   : > { %v1122_v25 = vsel %vm325_vm0, %v584_v23, %v1046_v49  ;;  %v1103_v26 = vsel %vm325_vm0, %v489_v50, %v1008_v24  ;;  %v534_v49 = vadd.f32 %v2012_v38, %v2019_v40  ;;  %v629_v24 = vadd.f32 %v2019_v40, %v2072_v8 }
 0x1ae   : > { %1154 = vst [vmem:[%s2145_s28 + $0x98] sm:$0xff] %v1122_v25  ;;  %1135 = vst [vmem:[%s2145_s28] sm:$0xff] %v1103_v26  ;;  %v634_v38 = vadd.f32 %v2069_v6, %v2019_v40 }
 0x1b0   : > { %v1010_v31 = vpop.permute.xlu0 %1009 }
 0x1b1   : > { %v1012_v28 = vpop.permute.xlu1 %1011  ;;  %v1104_v51 = vsel %vm325_vm0, %v494_v52, %v1010_v31  ;;  %v539_v52 = vadd.f32 %v2019_v40, %v2024_v43 }
 0x1b2   : > { %v1105_v29 = vsel %vm325_vm0, %v499_v27, %v1012_v28  ;;  %1136 = vst [vmem:[%s2145_s28 + $0x8] sm:$0xff] %v1104_v51 }
 0x1b3   : > { %1137 = vst [vmem:[%s2145_s28 + $0x10] sm:$0xff] %v1105_v29 }
 0x1b4   : > { %v1048_v30 = vpop.permute.xlu0 %1047 }
 0x1b5   : > { %v1050_v45 = vpop.permute.xlu1 %1049  ;;  %v1123_v33 = vsel %vm325_vm0, %v589_v3, %v1048_v30 }
 0x1b6   : > { %v1124_v58 = vsel %vm325_vm0, %v594_v41, %v1050_v45  ;;  %1155 = vst [vmem:[%s2145_s28 + $0xa0] sm:$0xff] %v1123_v33 }
 0x1b7   : > { %1156 = vst [vmem:[%s2145_s28 + $0xa8] sm:$0xff] %v1124_v58 }
 0x1b8   : > { %v1052_v53 = vpop.permute.xlu0 %1051 }
 0x1b9   : > { %v1014_v63 = vpop.permute.xlu1 %1013  ;;  %v1125_v54 = vsel %vm325_vm0, %v599_v62, %v1052_v53 }
 0x1ba   : > { %v1106_v1 = vsel %vm325_vm0, %v504_v60, %v1014_v63  ;;  %1157 = vst [vmem:[%s2145_s28 + $0xb0] sm:$0xff] %v1125_v54 }
 0x1bb   : > { %1138 = vst [vmem:[%s2145_s28 + $0x18] sm:$0xff] %v1106_v1 }
 0x1bc   : > { %v1016_v32 = vpop.permute.xlu0 %1015 }
 0x1bd   : > { %v1054_v7 = vpop.permute.xlu1 %1053  ;;  %v1107_v56 = vsel %vm325_vm0, %v509_v4, %v1016_v32 }
 0x1be   : > { %v1126_v9 = vsel %vm325_vm0, %v604_v5, %v1054_v7  ;;  %1139 = vst [vmem:[%s2145_s28 + $0x20] sm:$0xff] %v1107_v56 }
 0x1bf   : > { %1158 = vst [vmem:[%s2145_s28 + $0xb8] sm:$0xff] %v1126_v9 }
 0x1c0   : > { %v1056_v35 = vpop.permute.xlu0 %1055 }
 0x1c1   : > { %v1018_v57 = vpop.permute.xlu1 %1017  ;;  %v1127_v55 = vsel %vm325_vm0, %v609_v11, %v1056_v35 }
 0x1c2   : > { %v1108_v12 = vsel %vm325_vm0, %v514_v10, %v1018_v57  ;;  %1159 = vst [vmem:[%s2145_s28 + $0xc0] sm:$0xff] %v1127_v55 }
 0x1c3   : > { %1140 = vst [vmem:[%s2145_s28 + $0x28] sm:$0xff] %v1108_v12 }
 0x1c4   : > { %v1020_v34 = vpop.permute.xlu0 %1019 }
 0x1c5   : > { %v1058_v15 = vpop.permute.xlu1 %1057  ;;  %v1109_v61 = vsel %vm325_vm0, %v519_v14, %v1020_v34 }
 0x1c6   : > { %v1128_v17 = vsel %vm325_vm0, %v614_v48, %v1058_v15  ;;  %1141 = vst [vmem:[%s2145_s28 + $0x30] sm:$0xff] %v1109_v61 }
 0x1c7   : > { %1160 = vst [vmem:[%s2145_s28 + $0xc8] sm:$0xff] %v1128_v17 }
 0x1c8   : > { %v1060_v37 = vpop.permute.xlu0 %1059 }
 0x1c9   : > { %v1022_v20 = vpop.permute.xlu1 %1021  ;;  %v1129_v59 = vsel %vm325_vm0, %v619_v19, %v1060_v37 }
 0x1ca   : > { %v1110_v47 = vsel %vm325_vm0, %v524_v18, %v1022_v20  ;;  %1161 = vst [vmem:[%s2145_s28 + $0xd0] sm:$0xff] %v1129_v59 }
 0x1cb   : > { %1142 = vst [vmem:[%s2145_s28 + $0x38] sm:$0xff] %v1110_v47 }
 0x1cc   : > { %v1024_v36 = vpop.permute.xlu0 %1023 }
 0x1cd   : > { %v1062_v50 = vpop.permute.xlu1 %1061  ;;  %v1111_v2 = vsel %vm325_vm0, %v529_v21, %v1024_v36 }
 0x1ce   : > { %v1130_v23 = vsel %vm325_vm0, %v624_v22, %v1062_v50  ;;  %1143 = vst [vmem:[%s2145_s28 + $0x40] sm:$0xff] %v1111_v2 }
 0x1cf   : > { %1162 = vst [vmem:[%s2145_s28 + $0xd8] sm:$0xff] %v1130_v23 }
 0x1d0   : > { %v1064_v39 = vpop.permute.xlu0 %1063 }
 0x1d1   : > { %v1026_v25 = vpop.permute.xlu1 %1025  ;;  %v1131_v0 = vsel %vm325_vm0, %v629_v24, %v1064_v39 }
 0x1d2   : > { %v1112_v26 = vsel %vm325_vm0, %v534_v49, %v1026_v25  ;;  %1163 = vst [vmem:[%s2145_s28 + $0xe0] sm:$0xff] %v1131_v0 }
 0x1d3   : > { %1144 = vst [vmem:[%s2145_s28 + $0x48] sm:$0xff] %v1112_v26 }
 0x1d4   : > { %v1028_v27 = vpop.permute.xlu0 %1027 }
 0x1d5   : > { %v1066_v8 = vpop.permute.xlu1 %1065  ;;  %v1113_v31 = vsel %vm325_vm0, %v539_v52, %v1028_v27 }
 0x1d6   : > { %v1132_v28 = vsel %vm325_vm0, %v634_v38, %v1066_v8  ;;  %1145 = vst [vmem:[%s2145_s28 + $0x50] sm:$0xff] %v1113_v31 }
 0x1d7   : > { %1164 = vst [vmem:[%s2145_s28 + $0xe8] sm:$0xff] %v1132_v28 }
 0x1d9   : > { %v1030_v51 = vpop.permute.xlu1 %1029  ;;  %v1032_v29 = vpop.permute.xlu0 %1031 }
 0x1da   : > { %v1114_v43 = vsel %vm325_vm0, %v2022_v42, %v1030_v51  ;;  %v1115_v40 = vsel %vm325_vm0, %v2030_v46, %v1032_v29 }
 0x1db   : > { %1146 = vst [vmem:[%s2145_s28 + $0x58] sm:$0xff] %v1114_v43  ;;  %1147 = vst [vmem:[%s2145_s28 + $0x60] sm:$0xff] %v1115_v40 }
 0x1dd   : > { %v1034_v6 = vpop.permute.xlu1 %1033  ;;  %v1068_v41 = vpop.permute.xlu0 %1067 }
 0x1de   : > { %v1116_v3 = vsel %vm325_vm0, %v2027_v44, %v1034_v6  ;;  %v1133_v30 = vsel %vm325_vm0, %v2080_v16, %v1068_v41 }
 0x1df   : > { %1148 = vst [vmem:[%s2145_s28 + $0x68] sm:$0xff] %v1116_v3  ;;  %1165 = vst [vmem:[%s2145_s28 + $0xf0] sm:$0xff] %v1133_v30 }
 0x1e1   : > { %v1070_v42 = vpop.permute.xlu1 %1069 }
 0x1e2   : > { %v1134_v46 = vsel %vm325_vm0, %v2077_v13, %v1070_v42 }
 0x1e3   : > { %1166 = vst [vmem:[%s2145_s28 + $0xf8] sm:$0xff] %v1134_v46 }
 0x1e4   : > { %1562 = shalt.err (!%p1559_p3)
}
 0x1e5   : > { %s1563_s17 = scalar_lea.hbm %s2269_s13, 4096  ;;  %s1567_s20 = scalar_lea.hbm %s2325_s6, 8192 }
 0x1e6   : > { %p1564_p4 = scmp.ne.s32.totalorder %s2269_s13, %s1563_s17  ;;  %p1568_p9 = scmp.lt.u32.totalorder %s2269_s13, %s2325_s6 }
 0x1e7   : > { %p1569_p10 = scmp.lt.u32.totalorder %s1567_s20, %s1563_s17  ;;  %p1571_p12 = scmp.lt.u32.totalorder %s1563_s17, %s2269_s13 }
 0x1e8   : > { %p1565_p7 = pnand %p1564_p4, %p1691_p5 }
 0x1e9   : > { %p1570_p11 = por %p1569_p10, %p1568_p9 }
 0x1ea   : > { %p1566_p8 = pneg %p1565_p7 }
 0x1eb   : > { %p1572_p13 = por %p1571_p12, %p1570_p11 }
 0x1ed   : > { %p1573_p0 = pnand %p1572_p13, %p1566_p8 }
 0x1ef   : > { %1576 = shalt.err (!%p1573_p0)
}
 0x1f0   : > { %s1616_s29 = smov 128   ;;  %s1617_s10 = smov 8  }
 0x1f1   : > { %1506 = dma.vmem_to_hbm [thread:$0]  (%p1691_p5), %s2271_s9, 4096, %s2269_s13, %s2278_s25, %s1616_s29, %s1616_s29, %s1617_s10  }
 0x1f2 PF: > { %p1512_p1 = scmp.ge.s32.totalorder %s1611_s24, 2  ;;  %s1196_s11 = sand.u32 1, %s1599_s21  }
 0x1f3   : > { %s1197_s14 = scalar_lea.sflag [#allocation3], %s1196_s11 }
 0x1f4   : > { %p1509_p2 = pnand %p1512_p1, %p1695_p6 }
 0x1f6   : > { %1594 = dma.done.wait (!%p1509_p2), %s1197_s14, 4096  }
 0x1f7   : > { %1596 = vsyncadd (!%p1509_p2), %s1197_s14, 4294963200  ;;  %p16_p3 = scmp.ge.s32.totalorder %s1678_s27, 4   ;;  %s2328_s21 = smov %s1603_s22 }
 0x1f8   : > { %s2329_s22 = smov %s1607_s23  ;;  %s2330_s23 = smov %s1689_s30 }
 0x1f9   : > { %s2331_s24 = smov %s1678_s27  ;;  %18 = sbr.rel (!%p16_p3) target bundleno = 3 (0x3), region = 82 }
 0x200   :  { %1202 = vsyncpa [#allocation3], 1 }
 0x201   :  { %1204 = vsyncpa [#allocation3 + $0x1], 1 }

</bundles_post_ra>
